<compile_context>
chip_gen: v6e
topology: v6e:2x2x1
jax: 0.10.0
libtpu: 0.0.40
codegen_flags: <defaults>
</compile_context>

<pallas_src>
import functools

import jax
import jax.numpy as jnp
from jax.experimental import pallas as pl
from jax.experimental.pallas import tpu as pltpu


def _round_up(v, m):
    return ((v + m - 1) // m) * m


def _pick_tile(n_pad, requested, align=128):
    """Largest multiple of `align` that is <= requested and divides n_pad."""
    t = min(requested, n_pad)
    t = max(align, (t // align) * align)
    while n_pad % t:
        t -= align
    return t


# ---------------------------------------------------------------------------
# Stage 2 kernel: out[i] = sum_k A[i, k] @ hidden[k]   (f32 accumulation)
# ---------------------------------------------------------------------------
def _aggregate_kernel(a_ref, h_ref, o_ref, acc_ref, *, tile_k):
    k = pl.program_id(1)

    @pl.when(k == 0)
    def _():
        acc_ref[...] = jnp.zeros_like(acc_ref)

    start = pl.multiple_of(k * tile_k, 128)
    h_blk = h_ref[pl.ds(start, tile_k), :]           # slice of resident hidden
    acc_ref[...] += jnp.dot(a_ref[...], h_blk,
                            preferred_element_type=jnp.float32)

    @pl.when(k == pl.num_programs(1) - 1)
    def _():
        o_ref[...] = acc_ref[...].astype(o_ref.dtype)


def gcn_conv_dense(x, A, weight, bias, *, tile_m=512, tile_k=1024,
                   compute_dtype=jnp.bfloat16):
    """GCNConv_dense forward: A @ (x @ W^T + b).

    x:      [N, F_in]      node features
    A:      [N, N]         dense adjacency
    weight: [F_out, F_in]  (PyTorch nn.Linear layout)
    bias:   [F_out]
    returns [N, F_out]     float32
    """
    N, F_in = x.shape
    F_out = weight.shape[0]
    compute_dtype = jnp.dtype(compute_dtype)

    # ---- stage 1 (tiny): hidden = x @ W^T + b, plain XLA, full f32 ---------
    hidden = (jnp.dot(x.astype(jnp.float32), weight.T.astype(jnp.float32),
                      preferred_element_type=jnp.float32)
              + bias.astype(jnp.float32))

    # ---- tiling / layout ----------------------------------------------------
    N_pad = _round_up(N, 128)
    F_out_pad = _round_up(F_out, 128)     # exactly 128-aligned (v5e MXU width)

    tile_m = _pick_tile(N_pad, _round_up(max(tile_m, 128), 128))
    if N_pad // tile_m < 2 and N_pad >= 256:
        # >= 2 row tiles so v7x megacore can split them across its two TCs.
        tile_m = _pick_tile(N_pad, N_pad // 2)
    tile_k = _pick_tile(N_pad, _round_up(max(tile_k, 128), 128))

    num_m = N_pad // tile_m
    num_k = N_pad // tile_k

    # ---- conditional padding + dtype cast (fused, no extra pass when aligned)
    if N_pad != N:
        A_c = jnp.zeros((N_pad, N_pad), compute_dtype)
        A_c = A_c.at[:N, :N].set(A.astype(compute_dtype))
    elif A.dtype != compute_dtype:
        A_c = A.astype(compute_dtype)     # amortized: A is reused across layers
    else:
        A_c = A

    if (N_pad != N) or (F_out_pad != F_out) or (hidden.dtype != compute_dtype):
        h_c = jnp.zeros((N_pad, F_out_pad), compute_dtype)
        h_c = h_c.at[:N, :F_out].set(hidden.astype(compute_dtype))
    else:
        h_c = hidden

    # ---- explicit VMEM budget (independent of N except for resident hidden) --
    csize = compute_dtype.itemsize
    working_set = (2 * tile_m * tile_k * csize        # double-buffered A slab
                   + 2 * N_pad * F_out_pad * csize    # resident hidden (assume 2 bufs)
                   + 2 * tile_m * F_out_pad * 4       # double-buffered output tile
                   + tile_m * F_out_pad * 4)          # f32 accumulator scratch
    vmem_limit = int(min(1.5 * working_set + (8 << 20), 48 << 20))

    kernel = functools.partial(_aggregate_kernel, tile_k=tile_k)

    # TODO(synk): on v7x, pin the constant-index `hidden` input to a single
    # buffer (pipeline_mode=pl.Buffered(1)) to reclaim N_pad*F_out_pad bytes.
    out_p = pl.pallas_call(
        kernel,
        out_shape=jax.ShapeDtypeStruct((N_pad, F_out_pad), jnp.float32),
        grid_spec=pltpu.PrefetchScalarGridSpec(
            num_scalar_prefetch=0,
            grid=(num_m, num_k),
            in_specs=[
                pl.BlockSpec((tile_m, tile_k), lambda i, k: (i, k)),     # streamed A
                pl.BlockSpec((N_pad, F_out_pad), lambda i, k: (0, 0)),   # resident hidden
            ],
            out_specs=pl.BlockSpec((tile_m, F_out_pad), lambda i, k: (i, 0)),
            scratch_shapes=[pltpu.VMEM((tile_m, F_out_pad), jnp.float32)],
        ),
        compiler_params=pltpu.CompilerParams(
            dimension_semantics=("parallel", "arbitrary"),
            vmem_limit_bytes=vmem_limit,
        ),
        cost_estimate=pl.CostEstimate(
            flops=2 * N_pad * N_pad * F_out_pad,
            transcendentals=0,
            bytes_accessed=(N_pad * N_pad * csize
                            + N_pad * F_out_pad * csize
                            + N_pad * F_out_pad * 4),
        ),
    )(A_c, h_c)

    return out_p[:N, :F_out]


if __name__ == "__main__":
    key = jax.random.PRNGKey(0)

    def make_inputs(k, N, F_in, F_out):
        kx, ka, kw, kb = jax.random.split(k, 4)
        x = jax.random.normal(kx, (N, F_in), dtype=jnp.float32)
        A = jax.random.uniform(ka, (N, N), dtype=jnp.float32)
        bound = 1.0 / (F_in ** 0.5)
        w = jax.random.uniform(kw, (F_out, F_in), jnp.float32, -bound, bound)
        b = jax.random.uniform(kb, (F_out,), jnp.float32, -bound, bound)
        return x, A, w, b

    k1, k2 = jax.random.split(key)

    # Case 1: lane-aligned N (no padding pass over A), bf16 compute,
    # small tiles to exercise the multi-row-tile + K-accumulation path.
    N, F_in, F_out = 384, 64, 32
    x, A, w, b = make_inputs(k1, N, F_in, F_out)
    out = jax.block_until_ready(
        gcn_conv_dense(x, A, w, b, tile_m=128, tile_k=128,
                       compute_dtype=jnp.bfloat16))
    hidden = x @ w.T + b
    ref_f32 = A @ hidden
    ref_bf16 = (A.astype(jnp.bfloat16).astype(jnp.float32)
                @ hidden.astype(jnp.bfloat16).astype(jnp.float32))
    assert out.shape == (N, F_out)
    # tight check vs identically-quantized inputs; loose sanity vs full f32
    assert bool(jnp.allclose(out, ref_bf16, atol=1e-3, rtol=1e-3))
    assert bool(jnp.allclose(out, ref_f32, atol=2e-1, rtol=5e-2))

    # Case 2: ragged N (exercises the conditional padding path), f32 compute,
    # default tile sizes (clamped to the small problem).
    N, F_in, F_out = 200, 48, 20
    x, A, w, b = make_inputs(k2, N, F_in, F_out)
    out = jax.block_until_ready(
        gcn_conv_dense(x, A, w, b, compute_dtype=jnp.float32))
    ref = A @ (x @ w.T + b)
    assert out.shape == (N, F_out)
    assert bool(jnp.allclose(out, ref, atol=1e-3, rtol=1e-3))

    print("KERNEL_OK")
</pallas_src>

<mosaic_0001>
module attributes {stable_mosaic.version = 11 : i64} {
  func.func @_aggregate_kernel(%arg0: i32, %arg1: i32, %arg2: memref<128x128xbf16, #tpu.memory_space<vmem>>, %arg3: memref<384x128xbf16, #tpu.memory_space<vmem>>, %arg4: memref<128x128xf32, #tpu.memory_space<vmem>>, %arg5: memref<128x128xf32, #tpu.memory_space<vmem>>) attributes {dimension_semantics = [#tpu.dimension_semantics<parallel>, #tpu.dimension_semantics<arbitrary>], iteration_bounds = array<i64: 3, 3>, scalar_prefetch = 0 : i64, scratch_operands = 1 : i64, tpu.core_type = #tpu.core_type<tc>, window_params = [{transform_indices = @transform_0, window_bounds = array<i64: 128, 128>}, {pipeline_mode = #tpu.pipeline_mode<synchronous>, transform_indices = @transform_1, window_bounds = array<i64: 384, 128>}, {transform_indices = @transform_2, window_bounds = array<i64: 128, 128>}]} {
    %c0_i32 = arith.constant 0 : i32
    %0 = arith.cmpi eq, %arg1, %c0_i32 : i32
    %1 = arith.extui %0 : i1 to i32
    %c0_i32_0 = arith.constant 0 : i32
    %2 = arith.cmpi ne, %1, %c0_i32_0 : i32
    scf.if %2 {
      %cst_8 = arith.constant 0.000000e+00 : f32
      %15 = vector.broadcast %cst_8 : f32 to vector<128x128xf32>
      %c0_9 = arith.constant 0 : index
      %c0_10 = arith.constant 0 : index
      %16 = vector.load %arg5[%c0_9, %c0_10] : memref<128x128xf32, #tpu.memory_space<vmem>>, vector<128x128xf32>
      tpu.vector_store %arg5[%c0_9, %c0_10], %15 {strides = array<i32>} : memref<128x128xf32, #tpu.memory_space<vmem>>, vector<128x128xf32>,
    } else {
    }
    %c128_i32 = arith.constant 128 : i32
    %3 = arith.muli %arg1, %c128_i32 : i32
    %4 = tpu.assume_multiple %3, 128 : i32
    %5 = arith.index_cast %4 : i32 to index
    %c0 = arith.constant 0 : index
    %6 = vector.load %arg3[%5, %c0] : memref<384x128xbf16, #tpu.memory_space<vmem>>, vector<128x128xbf16>
    %c0_1 = arith.constant 0 : index
    %c0_2 = arith.constant 0 : index
    %7 = vector.load %arg5[%c0_1, %c0_2] : memref<128x128xf32, #tpu.memory_space<vmem>>, vector<128x128xf32>
    %c0_3 = arith.constant 0 : index
    %c0_4 = arith.constant 0 : index
    %8 = vector.load %arg2[%c0_3, %c0_4] : memref<128x128xbf16, #tpu.memory_space<vmem>>, vector<128x128xbf16>
    %cst = arith.constant dense<0.000000e+00> : vector<128x128xf32>
    %9 = tpu.matmul %8, %6, %cst {dimension_numbers = #tpu.dot_dimension_numbers<[1], [0], [0], [1], [0, 0, 1, 1], [], []>} : vector<128x128xbf16>, vector<128x128xbf16>, vector<128x128xf32> -> vector<128x128xf32>
    %10 = arith.addf %7, %9 : vector<128x128xf32>
    %c0_5 = arith.constant 0 : index
    %c0_6 = arith.constant 0 : index
    %11 = vector.load %arg5[%c0_5, %c0_6] : memref<128x128xf32, #tpu.memory_space<vmem>>, vector<128x128xf32>
    tpu.vector_store %arg5[%c0_5, %c0_6], %10 {strides = array<i32>} : memref<128x128xf32, #tpu.memory_space<vmem>>, vector<128x128xf32>,
    %c2_i32 = arith.constant 2 : i32
    %12 = arith.cmpi eq, %arg1, %c2_i32 : i32
    %13 = arith.extui %12 : i1 to i32
    %c0_i32_7 = arith.constant 0 : i32
    %14 = arith.cmpi ne, %13, %c0_i32_7 : i32
    scf.if %14 {
      %c0_8 = arith.constant 0 : index
      %c0_9 = arith.constant 0 : index
      %15 = vector.load %arg5[%c0_8, %c0_9] : memref<128x128xf32, #tpu.memory_space<vmem>>, vector<128x128xf32>
      %c0_10 = arith.constant 0 : index
      %c0_11 = arith.constant 0 : index
      %16 = vector.load %arg4[%c0_10, %c0_11] : memref<128x128xf32, #tpu.memory_space<vmem>>, vector<128x128xf32>
      tpu.vector_store %arg4[%c0_10, %c0_11], %15 {strides = array<i32>} : memref<128x128xf32, #tpu.memory_space<vmem>>, vector<128x128xf32>,
    } else {
    }
    return
  }
  func.func @transform_0(%arg0: i32, %arg1: i32) -> (i32, i32) {
    %c0_i32 = arith.constant 0 : i32
    return %arg0, %arg1 : i32, i32
  }
  func.func @transform_1(%arg0: i32, %arg1: i32) -> (i32, i32) {
    %c0_i32 = arith.constant 0 : i32
    %c0_i32_0 = arith.constant 0 : i32
    %c0_i32_1 = arith.constant 0 : i32
    return %c0_i32, %c0_i32_0 : i32, i32
  }
  func.func @transform_2(%arg0: i32, %arg1: i32) -> (i32, i32) {
    %c0_i32 = arith.constant 0 : i32
    %c0_i32_0 = arith.constant 0 : i32
    return %arg0, %c0_i32 : i32, i32
  }
}

</mosaic_0001>

<bundles_post_ra>
// kernel: tpu_custom_call.1
= control target key start
LH: loop header
LB: loop body
LE: loop exit
PB: predicated region body
PF: predicated region fallthrough
CT: control target
= control target key end

     0   :  { %s1368_s0 = inlined_call_operand.hbm [shape: bf16[384,384], index: 0, kind: input, shape index: {}]   ;;  %s1369_s1 = inlined_call_operand.hbm [shape: bf16[384,128], index: 1, kind: input, shape index: {}]   ;;  %s1370_s2 = inlined_call_operand.hbm [shape: f32[384,128], index: 2, kind: output, shape index: {}]  }
   0x1   :  { %1382 = sst [smem:[#allocation17_spill]] %s1369_s1 }
   0x2   :  { %7 = vsyncpa [#allocation4], 0 }
   0x3   :  { %9 = vsyncpa [#allocation4 + $0x1], 0 }
   0x4   :  { %10 = vsyncpa [#allocation7], 0 }
   0x5   :  { %11 = vsyncpa [#allocation5], 0 }
   0x6   :  { %13 = vsyncpa [#allocation5 + $0x1], 0  ;;  %s1085_s9 = smov 0   ;;  %s1087_s10 = smov 0  }
   0x7   :  { %s1089_s11 = smov 0   ;;  %s1091_s12 = smov 0  }
   0x8   :  { %s1093_s13 = smov 0   ;;  %s1095_s14 = smov 0  }
   0x9   :  { %s1097_s15 = smov 0   ;;  %s1099_s16 = smov 0  }
   0xa   :  { %s1101_s17 = smov 0   ;;  %s1103_s18 = smov 0  }
   0xb   :  { %s1105_s19 = smov 0  }
   0xc LB: > { %1383 = sst [smem:[#allocation12_spill]] %s1019_s9  ;;  %s642_s20 = sadd.s32 4294967295, %s1059_s19   ;;  %s1059_s19 = sphi %s1105_s19, %s1418_s19   ;;  %s1055_s18 = sphi %s1103_s18, %s1417_s18   ;;  %s1051_s17 = sphi %s1101_s17, %s1409_s17   ;;  %s1047_s16 = sphi %s1099_s16, %s1416_s16   ;;  %s1043_s15 = sphi %s1097_s15, %s1408_s15   ;;  %s1039_s14 = sphi %s1095_s14, %s1415_s14   ;;  %s1035_s13 = sphi %s1093_s13, %s1414_s13   ;;  %s1031_s12 = sphi %s1091_s12, %s1413_s12   ;;  %s1027_s11 = sphi %s1089_s11, %s1412_s11   ;;  %s1023_s10 = sphi %s1087_s10, %s1411_s10   ;;  %s1019_s9 = sphi %s1085_s9, %s1410_s9  }
   0xd   : > { %1384 = sst [smem:[#allocation13_spill]] %s1051_s17  ;;  %s643_s21 = sadd.s32 4294967294, %s1059_s19  }
   0xe   : > { %1385 = sst [smem:[#allocation14_spill]] %s1059_s19  ;;  %p47_p0 = scmp.ne.s32.totalorder %s1039_s14, %s1035_s13 }
   0xf   : > { %p48_p1 = scmp.eq.s32.totalorder %s1059_s19, 0  ;;  %p53_p2 = scmp.ne.s32.totalorder %s1035_s13, %s1031_s12 }
  0x10   : > { %p1145_p3 = scmp.eq.s32.totalorder %s642_s20, 0  ;;  %p97_p5 = scmp.ne.s32.totalorder %s1027_s11, %s1023_s10 }
  0x11   : > { %p1150_p4 = por %p48_p1, %p47_p0  ;;  %p98_p7 = scmp.eq.s32.totalorder %s642_s20, 8 }
  0x12   : > { %p1158_p6 = por %p1145_p3, %p53_p2  ;;  %p103_p8 = scmp.ne.s32.totalorder %s1023_s10, %s1019_s9 }
  0x13   : > { %p104_p9 = scmp.eq.s32.totalorder %s643_s21, 8  ;;  %p1164_p10 = por %p98_p7, %p97_p5 }
  0x14   : > { %s1388_s26 = scalar_select %p1158_p6, 1, 0 }
  0x15   : > { %s1389_s27 = scalar_select %p1164_p10, 1, 0 }
  0x16   : > { %p644_p11 = scmp.ge.s32.totalorder %s1059_s19, 1  ;;  %p1169_p12 = por %p104_p9, %p103_p8 }
  0x17   : > { %p111_p13 = scmp.lt.s32.totalorder %s1059_s19, 10  ;;  %s1061_s30 = smov [#allocation6]  }
  0x18   : > { %s1390_s28 = scalar_select %p1169_p12, 1, 0 }
  0x19   : > { %p1174_p0 = pnand %p644_p11, %p111_p13  ;;  %s123_s3 = sshll.u32 %s1061_s30, 4  ;;  %s124_s3 = int_to_ptr.vmem [resolvable:$true] %s123_s3 }
  0x1a   : > { %1391 = sst [smem:[#allocation15_spill]] %s1390_s28  ;;  %p767_p2 = scmp.lt.s32.totalorder %s1059_s19, 9 }
  0x1b   : > { %s1392_s29 = scalar_select %p1174_p0, 1, 0 }
  0x1c   : > { %p754_p1 = pneg %p1174_p0  ;;  %p1189_p7 = pnand %p767_p2, %p1150_p4 }
  0x1d   : > { %s892_s6 = scalar_lea.vmem %s124_s3, 3072  ;;  %p900_p12 = scmp.lt.s32.totalorder %s124_s3, %s124_s3 }
  0x1e   : > { %p1183_p5 = pnand %p754_p1, %p1145_p3  ;;  %p893_p9 = scmp.ne.s32.totalorder %s124_s3, %s892_s6 }
  0x1f   : > { %p901_p10 = scmp.lt.s32.totalorder %s892_s6, %s892_s6 }
  0x20   : > { %p883_p8 = pneg %p1183_p5 }
  0x21   : > { %p902_p6 = por %p901_p10, %p900_p12 }
  0x22   : > { %p895_p11 = pnand %p893_p9, %p883_p8 }
  0x24   : > { %p896_p13 = pneg %p895_p11 }
  0x26   : > { %p903_p0 = pnand %p902_p6, %p896_p13 }
  0x28   : > { %906 = shalt.err (!%p903_p0)
}
  0x29   : > { %s1374_s7 = smov 64   ;;  %s1375_s8 = smov 4  }
  0x2a   : > { %s1395_s1 = sld [smem:[#allocation17_spill]]  ;;  %s28_s21 = sadd.s32 1, %s1051_s17 }
  0x2b   : > { %s31_s25 = sadd.s32 1, %s1055_s18  ;;  %p29_p4 = scmp.ge.s32.totalorder %s28_s21, 3 }
  0x2c   : > { %s137_s30 = sand.u32 1, %s1039_s14   ;;  %s745_s22 = smul.u32 48, %s1055_s18 }
  0x2d   : > { %s647_s6 = sshll.u32 %s137_s30, 6  ;;  %s1420_s21 = smov (%p29_p4, %s28_s21), 0 }
  0x2e   : > { %1396 = sst [smem:[#allocation16_spill]] %s1420_s21  ;;  %s1422_s25 = smov (!%p29_p4, %s31_s25), %s1055_s18 }
  0x2f   : > { %s36_s4 = ssub.s32 %s1051_s17, %s1420_s21  ;;  %p33_p6 = scmp.ge.s32.totalorder %s1422_s25, 3 }
  0x30   : > { %757 = dma.hbm_to_vmem [thread:$0]  (!%p1183_p5), %s1395_s1, 3072, %s124_s3, [#allocation7], %s1374_s7, %s1374_s7, %s1375_s8  }
  0x31   : > { %s141_s12 = scalar_lea.vmem [#allocation3], %s647_s6  ;;  %s1424_s25 = smov (%p33_p6, %s1422_s25), 0 }
  0x32   : > { %s150_s3 = sshll.u32 %s141_s12, 4  ;;  %s147_s20 = sadd.s32 %s1051_s17, %s745_s22  ;;  %s1215_s3 = int_to_ptr.vmem [resolvable:$true] %s150_s3 }
  0x33   : > { %s35_s7 = ssub.s32 %s1055_s18, %s1424_s25  ;;  %s650_s8 = sshll.u32 %s147_s20, 6 }
  0x34   : > { %s37_s24 = sor.u32 %s36_s4, %s35_s7  ;;  %p85_p10 = scmp.eq.s32.totalorder %s35_s7, 0 }
  0x35   : > { %p38_p12 = scmp.eq.s32.totalorder %s37_s24, 0  ;;  %s149_s28 = scalar_lea.hbm %s1368_s0, %s650_s8 }
  0x36   : > { %s1397_s6 = sadd.s32 1, %s1027_s11  ;;  %s1398_s9 = sadd.s32 1, %s1039_s14 }
  0x37   : > { %s1225_s12 = scalar_select %p85_p10, %s1027_s11, %s1397_s6  }
  0x38   : > { %s1230_s19 = scalar_select %p38_p12, %s1039_s14, %s1398_s9  }
  0x39   : > { %s138_s22 = scalar_lea.sflag [#allocation4], %s137_s30  ;;  %p909_p0 = pneg %p1189_p7 }
  0x3a   : > { %s920_s17 = scalar_lea.vmem %s1215_s3, 1024  ;;  %s1064_s4 = smov [#allocation3]  }
  0x3b   : > { %p921_p1 = scmp.ne.s32.totalorder %s1215_s3, %s920_s17  ;;  %s925_s7 = sshll.u32 %s1064_s4, 4  ;;  %s926_s7 = int_to_ptr.vmem [resolvable:$false] %s925_s7 }
  0x3c   : > { %s927_s24 = scalar_lea.vmem %s926_s7, 2048  ;;  %p928_p8 = scmp.lt.s32.totalorder %s1215_s3, %s926_s7 }
  0x3d   : > { %p923_p2 = pnand %p921_p1, %p909_p0  ;;  %p929_p9 = scmp.lt.s32.totalorder %s927_s24, %s920_s17 }
  0x3f   : > { %p924_p5 = pneg %p923_p2  ;;  %p930_p11 = por %p929_p9, %p928_p8 }
  0x41   : > { %p931_p13 = pnand %p930_p11, %p924_p5 }
  0x43   : > { %934 = shalt.err (!%p931_p13)
}
  0x44   : > { %s1065_s1 = smov 192   ;;  %s1399_s9 = smov 4  }
  0x45   : > { %s1400_s8 = smov 64   ;;  %p1401_p4 = scmp.ne.s32.totalorder %s1392_s29, 0 }
  0x46   : > { %761 = dma.hbm_to_vmem [thread:$0]  (!%p1189_p7), %s149_s28, 1024, %s1215_s3, %s138_s22, %s1065_s1, %s1400_s8, %s1399_s9  }
  0x47   : > { %162 = sbr.rel (%p1401_p4) target bundleno = 376 (0x178), region = 28  ;;  %s164_s21 = sand.u32 (!%p1401_p4), 1, %s1035_s13  }
  0x48   : > { %s652_s30 = sshll.u32 (!%p1401_p4), %s164_s21, 6  ;;  %s165_s20 = scalar_lea.sflag (!%p1401_p4), [#allocation4], %s164_s21 }
  0x49   : > { %s1245_s6 = scalar_lea.vmem (!%p1401_p4), [#allocation3], %s652_s30  ;;  %p1402_p6 = scmp.ne.s32.totalorder (!%p1401_p4), %s1388_s26, 0 }
  0x4c   : > { %1006 = dma.done.wait (%p1402_p6), %s165_s20, 1024  }
  0x4d   : > { %1008 = vsyncadd (%p1402_p6), %s165_s20, 4294966272 }
  0x4e   : > { %1010 = dma.done.wait (%p1145_p3), [#allocation7], 3072  }
  0x4f   : > { %1012 = vsyncadd (%p1145_p3), [#allocation7], 4294964224  ;;  %s190_s17 = sand.u32 1, %s1023_s10   ;;  %p655_p7 = scmp.ne.s32.totalorder %s1043_s15, 0 }
  0x50   : > { %s654_s28 = sshll.u32 %s190_s17, 7 }
  0x51   : > { %s1258_s29 = scalar_lea.vmem [#allocation8], %s654_s28  ;;  %199 = sbr.rel (%p655_p7) target bundleno = 95 (0x5f), region = 40 }
  0x56   : > { %v1066_v0 = vmov 0.0  }
  0x57   : > { %200 = vst [vmem:[#allocation2 + $0x30] sm:$0xff] %v1066_v0  ;;  %201 = vst [vmem:[#allocation2] sm:$0xff] %v1066_v0 }
  0x58   : > { %202 = vst [vmem:[#allocation2 + $0x58] sm:$0xff] %v1066_v0  ;;  %203 = vst [vmem:[#allocation2 + $0x18] sm:$0xff] %v1066_v0 }
  0x59   : > { %204 = vst [vmem:[#allocation2 + $0x50] sm:$0xff] %v1066_v0  ;;  %205 = vst [vmem:[#allocation2 + $0x68] sm:$0xff] %v1066_v0 }
  0x5a   : > { %206 = vst [vmem:[#allocation2 + $0x8] sm:$0xff] %v1066_v0  ;;  %207 = vst [vmem:[#allocation2 + $0x48] sm:$0xff] %v1066_v0 }
  0x5b   : > { %208 = vst [vmem:[#allocation2 + $0x40] sm:$0xff] %v1066_v0  ;;  %209 = vst [vmem:[#allocation2 + $0x20] sm:$0xff] %v1066_v0 }
  0x5c   : > { %210 = vst [vmem:[#allocation2 + $0x10] sm:$0xff] %v1066_v0  ;;  %211 = vst [vmem:[#allocation2 + $0x38] sm:$0xff] %v1066_v0 }
  0x5d   : > { %212 = vst [vmem:[#allocation2 + $0x60] sm:$0xff] %v1066_v0  ;;  %213 = vst [vmem:[#allocation2 + $0x70] sm:$0xff] %v1066_v0 }
  0x5e   : > { %214 = vst [vmem:[#allocation2 + $0x78] sm:$0xff] %v1066_v0  ;;  %215 = vst [vmem:[#allocation2 + $0x28] sm:$0xff] %v1066_v0 }
  0x5f PF: > { %s656_s23 = sshll.u32 %s1043_s15, 7  ;;  %v873_v1 = vld [vmem:[%s1245_s6] sm:$0xff]   ;;  %v875_v11 = vld [vmem:[%s1245_s6 + $0x8] sm:$0xff]   ;;  %v877_v13 = vld [vmem:[%s1245_s6 + $0x10] sm:$0xff]   ;;  %p674_p3 = scmp.ne.s32.totalorder %s1043_s15, 2 }
  0x60   : > { %s217_s26 = sshra.s32 %s656_s23, 3  ;;  %v874_v2 = vld [vmem:[%s1245_s6 + $0x20] sm:$0xff]   ;;  %713 = vmatprep.mubr.bf16.mxu0 %v873_v1  ;;  %v876_v12 = vld [vmem:[%s1245_s6 + $0x28] sm:$0xff]   ;;  %v878_v14 = vld [vmem:[%s1245_s6 + $0x30] sm:$0xff]  }
  0x61   : > { %s657_s5 = sshll.u32 %s217_s26, 2  ;;  %721 = vmatprep.mubr.bf16.mxu1 %v874_v2  ;;  %v879_v15 = vld [vmem:[%s1245_s6 + $0x18] sm:$0xff]   ;;  %v237_v21 = vld [vmem:[#allocation2 + $0x30] sm:$0xff]  ;;  %v238_v33 = vld [vmem:[#allocation2] sm:$0xff] }
  0x62   : > { %s1264_s3 = scalar_lea.vmem [#allocation6], %s657_s5  ;;  %v880_v16 = vld [vmem:[%s1245_s6 + $0x38] sm:$0xff]   ;;  %v245_v22 = vld [vmem:[#allocation2 + $0x40] sm:$0xff]  ;;  %v243_v39 = vld [vmem:[#allocation2 + $0x8] sm:$0xff] }
  0x63   : > { %v865_v3 = vld [vmem:[%s1264_s3 + $0x38] sm:$0xff]   ;;  %v866_v4 = vld [vmem:[%s1264_s3 + $0x30] sm:$0xff]   ;;  %v867_v5 = vld [vmem:[%s1264_s3 + $0x28] sm:$0xff]  }
  0x64   : > { %697 = vmatprep.subr.bf16.mxu0 %v865_v3  ;;  %729 = vmatprep.subr.bf16.mxu1 %v865_v3  ;;  %v868_v6 = vld [vmem:[%s1264_s3 + $0x20] sm:$0xff]   ;;  %v869_v7 = vld [vmem:[%s1264_s3 + $0x18] sm:$0xff]   ;;  %v870_v8 = vld [vmem:[%s1264_s3 + $0x10] sm:$0xff]  }
  0x65   : > { %698 = vmatpush3.bf16.msra.mxu0 %v865_v3  ;;  %737 = vmatpush3.bf16.msra.mxu1 %v865_v3  ;;  %v871_v9 = vld [vmem:[%s1264_s3 + $0x8] sm:$0xff]   ;;  %v872_v10 = vld [vmem:[%s1264_s3] sm:$0xff]   ;;  %v239_v17 = vld [vmem:[#allocation2 + $0x58] sm:$0xff] }
  0x66   : > { %699 = vmatprep.subr.bf16.mxu0 %v866_v4  ;;  %730 = vmatprep.subr.bf16.mxu1 %v866_v4  ;;  %v247_v18 = vld [vmem:[#allocation2 + $0x10] sm:$0xff]  ;;  %v240_v27 = vld [vmem:[#allocation2 + $0x18] sm:$0xff]  ;;  %v246_v34 = vld [vmem:[#allocation2 + $0x20] sm:$0xff] }
  0x67   : > { %v248_v28 = vld [vmem:[#allocation2 + $0x38] sm:$0xff]  ;;  %v241_v45 = vld [vmem:[#allocation2 + $0x50] sm:$0xff]  ;;  %v249_v46 = vld [vmem:[#allocation2 + $0x60] sm:$0xff] }
  0x68   : > { %v251_v40 = vld [vmem:[#allocation2 + $0x78] sm:$0xff]  ;;  %v244_v51 = vld [vmem:[#allocation2 + $0x48] sm:$0xff]  ;;  %v250_v58 = vld [vmem:[#allocation2 + $0x70] sm:$0xff] }
  0x69   : > { %700 = vmatpush3.bf16.msra.mxu0 %v866_v4  ;;  %738 = vmatpush3.bf16.msra.mxu1 %v866_v4  ;;  %v252_v52 = vld [vmem:[#allocation2 + $0x28] sm:$0xff] }
  0x6a   : > { %701 = vmatprep.subr.bf16.mxu0 %v867_v5  ;;  %731 = vmatprep.subr.bf16.mxu1 %v867_v5  ;;  %v242_v57 = vld [vmem:[#allocation2 + $0x68] sm:$0xff] }
  0x6d   : > { %702 = vmatpush3.bf16.msra.mxu0 %v867_v5  ;;  %739 = vmatpush3.bf16.msra.mxu1 %v867_v5 }
  0x6e   : > { %703 = vmatprep.subr.bf16.mxu0 %v868_v6  ;;  %732 = vmatprep.subr.bf16.mxu1 %v868_v6 }
  0x71   : > { %704 = vmatpush3.bf16.msra.mxu0 %v868_v6  ;;  %740 = vmatpush3.bf16.msra.mxu1 %v868_v6 }
  0x72   : > { %705 = vmatprep.subr.bf16.mxu0 %v869_v7  ;;  %733 = vmatprep.subr.bf16.mxu1 %v869_v7 }
  0x75   : > { %706 = vmatpush3.bf16.msra.mxu0 %v869_v7  ;;  %741 = vmatpush3.bf16.msra.mxu1 %v869_v7 }
  0x76   : > { %707 = vmatprep.subr.bf16.mxu0 %v870_v8  ;;  %734 = vmatprep.subr.bf16.mxu1 %v870_v8 }
  0x79   : > { %708 = vmatpush3.bf16.msra.mxu0 %v870_v8  ;;  %742 = vmatpush3.bf16.msra.mxu1 %v870_v8 }
  0x7a   : > { %709 = vmatprep.subr.bf16.mxu0 %v871_v9  ;;  %735 = vmatprep.subr.bf16.mxu1 %v871_v9 }
  0x7d   : > { %710 = vmatpush3.bf16.msra.mxu0 %v871_v9  ;;  %743 = vmatpush3.bf16.msra.mxu1 %v871_v9 }
  0x7e   : > { %711 = vmatprep.subr.bf16.mxu0 %v872_v10  ;;  %736 = vmatprep.subr.bf16.mxu1 %v872_v10 }
  0x81   : > { %712 = vmatpush3.bf16.msra.mxu0 %v872_v10  ;;  %744 = vmatpush3.bf16.msra.mxu1 %v872_v10 }
  0x84   : > { %714 = vmatmul.mubr.bf16.vlgmr.msra.gmra.mxu0 %v875_v11  ;;  %722 = vmatmul.mubr.bf16.vlgmr.msra.gmra.mxu1 %v876_v12 }
  0x85   : > { %717 = vmatprep.mubr.bf16.mxu0 %v877_v13  ;;  %725 = vmatprep.mubr.bf16.mxu1 %v878_v14 }
  0x8c   : > { %718 = vmatmul.mubr.bf16.gmra.mxu0 %v879_v15  ;;  %726 = vmatmul.mubr.bf16.gmra.mxu1 %v880_v16 }
 0x144   : > { %v715_v19 = vpop.f32.mrf.mxu0  ;;  %v723_v20 = vpop.f32.mrf.mxu1 }
 0x145   : > { %v464_v23 = vadd.f32 %v715_v19, %v239_v17  ;;  %v472_v24 = vadd.f32 %v723_v20, %v247_v18 }
 0x146   : > { %v399_v25 = vpop.f32.mrf.mxu0  ;;  %v431_v26 = vpop.f32.mrf.mxu1 }
 0x147   : > { %480 = vst [vmem:[#allocation2 + $0x58] sm:$0xff] %v464_v23  ;;  %488 = vst [vmem:[#allocation2 + $0x10] sm:$0xff] %v472_v24  ;;  %v462_v29 = vadd.f32 %v399_v25, %v237_v21  ;;  %v470_v30 = vadd.f32 %v431_v26, %v245_v22 }
 0x148   : > { %v716_v31 = vpop.f32.mrf.mxu0  ;;  %v724_v32 = vpop.f32.mrf.mxu1 }
 0x149   : > { %478 = vst [vmem:[#allocation2 + $0x30] sm:$0xff] %v462_v29  ;;  %486 = vst [vmem:[#allocation2 + $0x40] sm:$0xff] %v470_v30  ;;  %v465_v35 = vadd.f32 %v716_v31, %v240_v27  ;;  %v473_v36 = vadd.f32 %v724_v32, %v248_v28 }
 0x14a   : > { %v402_v37 = vpop.f32.mrf.mxu0  ;;  %v434_v38 = vpop.f32.mrf.mxu1 }
 0x14b   : > { %481 = vst [vmem:[#allocation2 + $0x18] sm:$0xff] %v465_v35  ;;  %489 = vst [vmem:[#allocation2 + $0x38] sm:$0xff] %v473_v36  ;;  %v463_v41 = vadd.f32 %v402_v37, %v238_v33  ;;  %v471_v42 = vadd.f32 %v434_v38, %v246_v34 }
 0x14c   : > { %v719_v43 = vpop.f32.mrf.mxu0  ;;  %v727_v44 = vpop.f32.mrf.mxu1 }
 0x14d   : > { %479 = vst [vmem:[#allocation2] sm:$0xff] %v463_v41  ;;  %487 = vst [vmem:[#allocation2 + $0x20] sm:$0xff] %v471_v42  ;;  %v468_v47 = vadd.f32 %v719_v43, %v243_v39  ;;  %v476_v48 = vadd.f32 %v727_v44, %v251_v40 }
 0x14e   : > { %v415_v49 = vpop.f32.mrf.mxu0  ;;  %v447_v50 = vpop.f32.mrf.mxu1 }
 0x14f   : > { %484 = vst [vmem:[#allocation2 + $0x8] sm:$0xff] %v468_v47  ;;  %492 = vst [vmem:[#allocation2 + $0x78] sm:$0xff] %v476_v48  ;;  %v466_v53 = vadd.f32 %v415_v49, %v241_v45  ;;  %v474_v54 = vadd.f32 %v447_v50, %v249_v46 }
 0x150   : > { %v720_v55 = vpop.f32.mrf.mxu0  ;;  %v728_v56 = vpop.f32.mrf.mxu1 }
 0x151   : > { %482 = vst [vmem:[#allocation2 + $0x50] sm:$0xff] %v466_v53  ;;  %490 = vst [vmem:[#allocation2 + $0x60] sm:$0xff] %v474_v54  ;;  %v469_v59 = vadd.f32 %v720_v55, %v244_v51  ;;  %v477_v60 = vadd.f32 %v728_v56, %v252_v52  ;;  %497 = sbr.rel (%p674_p3) target bundleno = 351 (0x15f), region = 44 }
 0x152   : > { %v418_v61 = vpop.f32.mrf.mxu0  ;;  %v450_v62 = vpop.f32.mrf.mxu1 }
 0x153   : > { %485 = vst [vmem:[#allocation2 + $0x48] sm:$0xff] %v469_v59  ;;  %493 = vst [vmem:[#allocation2 + $0x28] sm:$0xff] %v477_v60  ;;  %v467_v63 = vadd.f32 %v418_v61, %v242_v57  ;;  %v475_v0 = vadd.f32 %v450_v62, %v250_v58 }
 0x155   : > { %483 = vst [vmem:[#allocation2 + $0x68] sm:$0xff] %v467_v63  ;;  %491 = vst [vmem:[#allocation2 + $0x70] sm:$0xff] %v475_v0 }
 0x156   : > { %v498_v1 = vld [vmem:[#allocation2 + $0x30] sm:$0xff]  ;;  %v499_v2 = vld [vmem:[#allocation2] sm:$0xff]  ;;  %v500_v3 = vld [vmem:[#allocation2 + $0x58] sm:$0xff] }
 0x157   : > { %514 = vst [vmem:[%s1258_s29] sm:$0xff] %v498_v1  ;;  %515 = vst [vmem:[%s1258_s29 + $0x8] sm:$0xff] %v499_v2  ;;  %v501_v4 = vld [vmem:[#allocation2 + $0x18] sm:$0xff]  ;;  %v504_v7 = vld [vmem:[#allocation2 + $0x8] sm:$0xff] }
 0x158   : > { %516 = vst [vmem:[%s1258_s29 + $0x10] sm:$0xff] %v500_v3  ;;  %v502_v5 = vld [vmem:[#allocation2 + $0x50] sm:$0xff]  ;;  %517 = vst [vmem:[%s1258_s29 + $0x18] sm:$0xff] %v501_v4  ;;  %v506_v9 = vld [vmem:[#allocation2 + $0x40] sm:$0xff] }
 0x159   : > { %518 = vst [vmem:[%s1258_s29 + $0x20] sm:$0xff] %v502_v5  ;;  %520 = vst [vmem:[%s1258_s29 + $0x30] sm:$0xff] %v504_v7  ;;  %v507_v10 = vld [vmem:[#allocation2 + $0x20] sm:$0xff]  ;;  %v508_v11 = vld [vmem:[#allocation2 + $0x10] sm:$0xff] }
 0x15a   : > { %v505_v8 = vld [vmem:[#allocation2 + $0x48] sm:$0xff]  ;;  %522 = vst [vmem:[%s1258_s29 + $0x40] sm:$0xff] %v506_v9  ;;  %v509_v12 = vld [vmem:[#allocation2 + $0x38] sm:$0xff]  ;;  %523 = vst [vmem:[%s1258_s29 + $0x48] sm:$0xff] %v507_v10 }
 0x15b   : > { %521 = vst [vmem:[%s1258_s29 + $0x38] sm:$0xff] %v505_v8  ;;  %524 = vst [vmem:[%s1258_s29 + $0x50] sm:$0xff] %v508_v11  ;;  %v510_v13 = vld [vmem:[#allocation2 + $0x60] sm:$0xff]  ;;  %v512_v15 = vld [vmem:[#allocation2 + $0x78] sm:$0xff] }
 0x15c   : > { %v503_v6 = vld [vmem:[#allocation2 + $0x68] sm:$0xff]  ;;  %525 = vst [vmem:[%s1258_s29 + $0x58] sm:$0xff] %v509_v12  ;;  %v511_v14 = vld [vmem:[#allocation2 + $0x70] sm:$0xff]  ;;  %526 = vst [vmem:[%s1258_s29 + $0x60] sm:$0xff] %v510_v13 }
 0x15d   : > { %519 = vst [vmem:[%s1258_s29 + $0x28] sm:$0xff] %v503_v6  ;;  %527 = vst [vmem:[%s1258_s29 + $0x68] sm:$0xff] %v511_v14  ;;  %v513_v16 = vld [vmem:[#allocation2 + $0x28] sm:$0xff] }
 0x15e   : > { %528 = vst [vmem:[%s1258_s29 + $0x70] sm:$0xff] %v512_v15  ;;  %529 = vst [vmem:[%s1258_s29 + $0x78] sm:$0xff] %v513_v16 }
 0x15f PF: > { %s680_s15 = sshll.u32 %s1047_s16, 11  ;;  %s544_s24 = sshll.u32 %s1258_s29, 4  ;;  %s1304_s24 = int_to_ptr.vmem [resolvable:$true] %s544_s24 }
 0x160   : > { %s1301_s7 = scalar_lea.hbm %s1370_s2, %s680_s15  ;;  %s1308_s1 = scalar_lea.sflag [#allocation5], %s190_s17 }
 0x161   : > { %s935_s9 = scalar_lea.vmem %s1304_s24, 2048  ;;  %p1403_p12 = scmp.ne.s32.totalorder %s1389_s27, 0 }
 0x162   : > { %p936_p10 = scmp.ne.s32.totalorder %s1304_s24, %s935_s9  ;;  %s1067_s16 = smov [#allocation8]  }
 0x163   : > { %s939_s8 = sshll.u32 %s1067_s16, 4  ;;  %s940_s8 = int_to_ptr.vmem [resolvable:$false] %s939_s8 }
 0x164   : > { %p937_p0 = pnand %p936_p10, %p1403_p12  ;;  %s941_s21 = scalar_lea.vmem %s940_s8, 4096 }
 0x165   : > { %p942_p2 = scmp.lt.s32.totalorder %s1304_s24, %s940_s8  ;;  %p943_p5 = scmp.lt.s32.totalorder %s941_s21, %s935_s9 }
 0x166   : > { %p938_p1 = pneg %p937_p0 }
 0x167   : > { %p944_p8 = por %p943_p5, %p942_p2 }
 0x169   : > { %p945_p9 = pnand %p944_p8, %p938_p1 }
 0x16b   : > { %948 = shalt.err (!%p945_p9)
}
 0x16c   : > { %s949_s30 = scalar_lea.hbm %s1301_s7, 2048  ;;  %s953_s17 = scalar_lea.hbm %s1370_s2, 6144 }
 0x16d   : > { %p950_p11 = scmp.ne.s32.totalorder %s1301_s7, %s949_s30  ;;  %p954_p6 = scmp.lt.s32.totalorder %s1301_s7, %s1370_s2 }
 0x16e   : > { %p955_p7 = scmp.lt.s32.totalorder %s953_s17, %s949_s30 }
 0x16f   : > { %p951_p13 = pnand %p950_p11, %p1403_p12 }
 0x170   : > { %p956_p3 = por %p955_p7, %p954_p6 }
 0x171   : > { %p952_p4 = pneg %p951_p13 }
 0x173   : > { %p957_p10 = pnand %p956_p3, %p952_p4 }
 0x175   : > { %960 = shalt.err (!%p957_p10)
}
 0x176   : > { %s1068_s23 = smov 128   ;;  %s1069_s26 = smov 8  }
 0x177   : > { %752 = dma.vmem_to_hbm [thread:$0]  (%p1403_p12), %s1304_s24, 2048, %s1301_s7, %s1308_s1, %s1068_s23, %s1068_s23, %s1069_s26  }
 0x178 PF: > { %s1404_s5 = sld [smem:[#allocation14_spill]] }
 0x179   : > { %s1405_s3 = sld [smem:[#allocation12_spill]] }
 0x17a   : > { %s1406_s15 = sld [smem:[#allocation15_spill]] }
 0x17e   : > { %p769_p0 = scmp.ge.s32.totalorder %s1404_s5, 2 }
 0x17f   : > { %s559_s22 = sand.u32 1, %s1405_s3  }
 0x180   : > { %p1407_p1 = scmp.ne.s32.totalorder %s1406_s15, 0  ;;  %s560_s4 = scalar_lea.sflag [#allocation5], %s559_s22 }
 0x182   : > { %p763_p2 = pnand %p769_p0, %p1407_p1 }
 0x184   : > { %p764_p5 = pneg %p763_p2 }
 0x186   : > { %1014 = dma.done.wait (%p764_p5), %s560_s4, 2048  }
 0x187   : > { %1016 = vsyncadd (%p764_p5), %s560_s4, 4294965248  ;;  %s19_s8 = sadd.s32 1, %s1404_s5   ;;  %s1408_s15 = sld [smem:[#allocation13_spill]] }
 0x188   : > { %p16_p8 = scmp.ge.s32.totalorder %s19_s8, 11   ;;  %s1409_s17 = sld [smem:[#allocation16_spill]] }
 0x189   : > { %s1410_s9 = smov %s1023_s10  ;;  %s1411_s10 = smov %s1027_s11 }
 0x18a   : > { %s1412_s11 = smov %s1225_s12  ;;  %s1413_s12 = smov %s1035_s13 }
 0x18b   : > { %s1414_s13 = smov %s1039_s14  ;;  %s1415_s14 = smov %s1230_s19 }
 0x18c   : > { %s1416_s16 = smov %s1055_s18  ;;  %s1417_s18 = smov %s1424_s25 }
 0x18d   : > { %s1418_s19 = smov %s19_s8  ;;  %18 = sbr.rel (!%p16_p8) target bundleno = 12 (0xc), region = 86 }
 0x192   :  { %565 = vsyncpa [#allocation4], 1 }
 0x193   :  { %567 = vsyncpa [#allocation4 + $0x1], 1 }
 0x194   :  { %568 = vsyncpa [#allocation7], 1 }
 0x195   :  { %569 = vsyncpa [#allocation5], 1 }
 0x196   :  { %571 = vsyncpa [#allocation5 + $0x1], 1 }

</bundles_post_ra>
